<compile_context>
chip_gen: v7x
topology: tpu7x:2x2x1
jax: 0.10.0
libtpu: 0.0.40
codegen_flags: <defaults>
</compile_context>

<pallas_src>
import jax
import jax.numpy as jnp
from jax.experimental import pallas as pl
from jax.experimental.pallas import tpu as pltpu

BN_EPS = 1e-5
SCORE_LANES = 8  # narrow score output block (full last dim -> one tiny store)


def _selectivenet_kernel(
    # activations (batch-tiled, f32 in HBM)
    audio_ref, text_ref,
    # encoder stand-in params
    w_slu_ref, b_slu_ref,
    w_nlu_ref, b_nlu_ref,
    # fused projector weights: [fea, 4C] = [W_sel | W_aux | W_sel @ W1_half]
    w_proj_a_ref, w_proj_t_ref,
    # packed (8, 4C) constants
    pack_ref,
    # outputs
    proj_ref,   # (tm, 4C)  [sel_a | aux_a | sel_t | aux_t]
    score_ref,  # (tm, SCORE_LANES)
):
    f32 = jnp.float32
    cdt = w_proj_a_ref.dtype              # MXU operand dtype (bf16 by default)
    four_c = w_proj_a_ref.shape[-1]
    two_c = four_c // 2

    pack = pack_ref[...]                   # (8, 4C) f32
    b_proj_a = pack[0:1, :]                # [b_sel_a | b_aux_a | folded selector bias]
    b_proj_t = pack[1:2, :]                # [b_sel_t | b_aux_t | 0]
    w2_row = pack[2:3, :two_c]             # BN-folded Linear(2C,1) weight row
    b2_row = pack[3:4, :SCORE_LANES]       # BN-folded bias (same value in every lane)

    # --- encoders ---
    # TODO(synk): slu.enc / nlu.enc internals are unspecified in the module
    # (arbitrary submodules passed to __init__); implemented as Linear+ReLU stand-ins.
    audio_fea = jnp.maximum(
        jnp.dot(audio_ref[...].astype(cdt), w_slu_ref[...],
                preferred_element_type=f32) + b_slu_ref[...], 0.0)
    text_fea = jnp.maximum(
        jnp.dot(text_ref[...].astype(cdt), w_nlu_ref[...],
                preferred_element_type=f32) + b_nlu_ref[...], 0.0)

    # dropout(rate=0.1) is identity at inference; reproduced as identity.

    # --- fused projections (sel | aux | selector pre-activation), N = 4C ---
    proj_a = jnp.dot(audio_fea.astype(cdt), w_proj_a_ref[...],
                     preferred_element_type=f32) + b_proj_a
    proj_t = jnp.dot(text_fea.astype(cdt), w_proj_t_ref[...],
                     preferred_element_type=f32) + b_proj_t

    # --- selector ---
    # TODO(synk): original torch.cat(..., dim=0) is shape-inconsistent with
    # Linear(2*com_fea_dim, ...); the only shape-valid reading is a feature
    # concat [sel_t | sel_a].  The Linear(2C,2C) was folded offline into the
    # projection weights, so h is just the sum of the selector slices
    # (the single copy of b_sel1' rides in b_proj_a's last 2C lanes).
    h = jnp.maximum(proj_t[:, two_c:] + proj_a[:, two_c:], 0.0)

    # Eval-mode BatchNorm1d + Linear(2C,1) folded into w2_row / b2_row; the
    # N=1 MXU matmul becomes a VPU multiply + lane (XLU) reduction.
    logit = jnp.sum(h * w2_row, axis=-1, keepdims=True)            # (tm, 1)
    score = jax.nn.sigmoid(logit + b2_row)                         # (tm, SCORE_LANES)

    # Merged lane-dense output slab: [sel_a | aux_a | sel_t | aux_t].
    proj_ref[:, :two_c] = proj_a[:, :two_c].astype(proj_ref.dtype)
    proj_ref[:, two_c:] = proj_t[:, :two_c].astype(proj_ref.dtype)
    score_ref[...] = score.astype(score_ref.dtype)


def _round_up(x, m):
    return ((x + m - 1) // m) * m


def cross_modal_selectivenet(audio, text, params, *,
                             compute_dtype=jnp.bfloat16,
                             out_dtype=jnp.float32,
                             batch_tile=1024):
    """Fold/pack params in the wrapper and invoke one pallas_call."""
    f32 = jnp.float32
    B, A_in = audio.shape
    T_in = text.shape[1]
    C = params["w_sel_audio"].shape[1]
    two_c, four_c = 2 * C, 4 * C

    # --- fold the selector Linear(2C,2C) into the per-modality projections ---
    w1 = params["w_sel1"].astype(f32)               # (2C, 2C)
    w1_t, w1_a = w1[:C, :], w1[C:, :]               # consume sel_t / sel_a

    w_proj_a = jnp.concatenate(
        [params["w_sel_audio"], params["w_aux_audio"],
         params["w_sel_audio"] @ w1_a], axis=1)     # (AF, 4C)
    w_proj_t = jnp.concatenate(
        [params["w_sel_text"], params["w_aux_text"],
         params["w_sel_text"] @ w1_t], axis=1)      # (TF, 4C)

    # All selector bias terms folded once, into the audio projection bias;
    # the text-side selector-bias lanes stay zero (kernel sums both slices).
    b_sel1_fold = (params["b_sel1"][0]
                   + params["b_sel_text"][0] @ w1_t
                   + params["b_sel_audio"][0] @ w1_a)               # (2C,)
    b_proj_a = jnp.concatenate(
        [params["b_sel_audio"][0], params["b_aux_audio"][0], b_sel1_fold])
    b_proj_t = jnp.concatenate(
        [params["b_sel_text"][0], params["b_aux_text"][0], jnp.zeros((two_c,), f32)])

    # Fold eval-mode BatchNorm1d (post-ReLU affine) + Linear(2C,1).
    scale = params["bn_gamma"][0] * jax.lax.rsqrt(params["bn_var"][0] + BN_EPS)
    shift = params["bn_beta"][0] - params["bn_mean"][0] * scale
    w2_col = params["w_sel2"][:, 0]                                 # (2C,)
    w2_fold = scale * w2_col
    b2_fold = jnp.sum(shift * w2_col) + params["b_sel2"][0, 0]

    # One (8, 4C) constant pack -> one DMA.  Row layout (kernel relies on it):
    #   0 = b_proj_a (incl. folded selector bias), 1 = b_proj_t,
    #   2[:2C] = w2_fold, 3 = b2_fold broadcast across lanes (kernel reads [:8]).
    pack = jnp.zeros((8, four_c), f32)
    pack = pack.at[0].set(b_proj_a).at[1].set(b_proj_t)
    pack = pack.at[2, :two_c].set(w2_fold)
    pack = pack.at[3, :].set(b2_fold)
    assert pack.shape == (8, four_c)

    cdt = compute_dtype
    ins = (
        audio.astype(f32), text.astype(f32),    # keep f32; cast per-tile in kernel
        params["w_slu"].astype(cdt), params["b_slu"].astype(f32),
        params["w_nlu"].astype(cdt), params["b_nlu"].astype(f32),
        w_proj_a.astype(cdt), w_proj_t.astype(cdt),
        pack,
    )

    # Batch tile: large (amortizes ~0.35 us/step overhead), multiple of 16 for
    # bf16 sublane packing, and >= 2 grid steps once B is big enough so the
    # "parallel" axis can feed both v7x TensorCores (a cheap no-op on v5e/v6e).
    if B <= 16:
        tm = B
    else:
        tm = min(batch_tile, max(16, _round_up((B + 1) // 2, 16)))
    grid = (pl.cdiv(B, tm),)

    def row_block(width):
        return pl.BlockSpec((tm, width), lambda i: (i, 0))

    def resident(arr):
        # Block index never changes -> weights stay resident across grid steps.
        # NOTE: for production-size encoder dims, add pipeline_mode=pl.Buffered(1)
        # here and size vmem_limit_bytes explicitly (v7x has only 64 MiB VMEM);
        # irrelevant at the toy 128-dim shapes in this script.
        return pl.BlockSpec(arr.shape, lambda i: (0, 0))

    in_specs = [
        row_block(A_in), row_block(T_in),
        resident(ins[2]), resident(ins[3]),
        resident(ins[4]), resident(ins[5]),
        resident(ins[6]), resident(ins[7]),
        resident(ins[8]),
    ]
    out_specs = (row_block(four_c), row_block(SCORE_LANES))
    out_shape = (
        jax.ShapeDtypeStruct((B, four_c), out_dtype),        # [sel_a|aux_a|sel_t|aux_t]
        jax.ShapeDtypeStruct((B, SCORE_LANES), jnp.float32),  # score, lane 0 canonical
    )

    proj, score_blk = pl.pallas_call(
        _selectivenet_kernel,
        out_shape=out_shape,
        grid=grid,
        in_specs=in_specs,
        out_specs=out_specs,
        compiler_params=pltpu.CompilerParams(dimension_semantics=("parallel",)),
    )(*ins)

    sel_a = proj[:, :C]
    aux_a = proj[:, C:two_c]
    sel_t = proj[:, two_c:two_c + C]
    aux_t = proj[:, two_c + C:]
    score = score_blk[:, :1]
    return sel_a, sel_t, aux_a, aux_t, score


# ----------------------------------------------------------------------------
# Reference (pure JAX, f32) and deterministic parameter construction.
# ----------------------------------------------------------------------------

def _reference(audio, text, params):
    relu = lambda x: jnp.maximum(x, 0.0)
    audio_fea = relu(audio @ params["w_slu"] + params["b_slu"])
    text_fea = relu(text @ params["w_nlu"] + params["b_nlu"])
    sel_a = audio_fea @ params["w_sel_audio"] + params["b_sel_audio"]
    sel_t = text_fea @ params["w_sel_text"] + params["b_sel_text"]
    aux_a = audio_fea @ params["w_aux_audio"] + params["b_aux_audio"]
    aux_t = text_fea @ params["w_aux_text"] + params["b_aux_text"]
    cat = jnp.concatenate([sel_t, sel_a], axis=-1)
    h = relu(cat @ params["w_sel1"] + params["b_sel1"])
    scale = params["bn_gamma"] * jax.lax.rsqrt(params["bn_var"] + BN_EPS)
    h = (h - params["bn_mean"]) * scale + params["bn_beta"]
    score = jax.nn.sigmoid(h @ params["w_sel2"] + params["b_sel2"])
    return sel_a, sel_t, aux_a, aux_t, score


def _linear_params(key, fan_in, fan_out):
    """PyTorch-style Linear init; weight stored pre-transposed as [in, out]."""
    kw, kb = jax.random.split(key)
    bound = 1.0 / (fan_in ** 0.5)
    w = jax.random.uniform(kw, (fan_in, fan_out), jnp.float32, -bound, bound)
    b = jax.random.uniform(kb, (1, fan_out), jnp.float32, -bound, bound)
    return w, b


def make_params(key, audio_in, text_in, audio_fea_dim, text_fea_dim, com_fea_dim):
    keys = jax.random.split(key, 8)
    p = {}
    p["w_slu"], p["b_slu"] = _linear_params(keys[0], audio_in, audio_fea_dim)
    p["w_nlu"], p["b_nlu"] = _linear_params(keys[1], text_in, text_fea_dim)
    p["w_sel_audio"], p["b_sel_audio"] = _linear_params(keys[2], audio_fea_dim, com_fea_dim)
    p["w_sel_text"], p["b_sel_text"] = _linear_params(keys[3], text_fea_dim, com_fea_dim)
    p["w_aux_audio"], p["b_aux_audio"] = _linear_params(keys[4], audio_fea_dim, com_fea_dim)
    p["w_aux_text"], p["b_aux_text"] = _linear_params(keys[5], text_fea_dim, com_fea_dim)
    p["w_sel1"], p["b_sel1"] = _linear_params(keys[6], 2 * com_fea_dim, 2 * com_fea_dim)
    p["w_sel2"], p["b_sel2"] = _linear_params(keys[7], 2 * com_fea_dim, 1)
    # BatchNorm1d(2*com_fea_dim) default init (eval-mode running stats)
    p["bn_gamma"] = jnp.ones((1, 2 * com_fea_dim), jnp.float32)
    p["bn_beta"] = jnp.zeros((1, 2 * com_fea_dim), jnp.float32)
    p["bn_mean"] = jnp.zeros((1, 2 * com_fea_dim), jnp.float32)
    p["bn_var"] = jnp.ones((1, 2 * com_fea_dim), jnp.float32)
    return p


if __name__ == "__main__":
    B = 8
    AUDIO_IN, TEXT_IN = 128, 128
    AUDIO_FEA_DIM, TEXT_FEA_DIM = 128, 128
    COM_FEA_DIM = 64  # fused projections operate on 4*COM = 256 lanes

    root = jax.random.PRNGKey(0)
    k_audio, k_text, k_params = jax.random.split(root, 3)

    audio = jax.random.normal(k_audio, (B, AUDIO_IN), jnp.float32)
    text = jax.random.normal(k_text, (B, TEXT_IN), jnp.float32)
    params = make_params(k_params, AUDIO_IN, TEXT_IN,
                         AUDIO_FEA_DIM, TEXT_FEA_DIM, COM_FEA_DIM)

    outs = cross_modal_selectivenet(audio, text, params)
    outs = jax.block_until_ready(outs)

    sel_a, sel_t, aux_a, aux_t, score = outs
    assert sel_a.shape == (B, COM_FEA_DIM)
    assert sel_t.shape == (B, COM_FEA_DIM)
    assert aux_a.shape == (B, COM_FEA_DIM)
    assert aux_t.shape == (B, COM_FEA_DIM)
    assert score.shape == (B, 1)
    assert bool(jnp.all(jnp.isfinite(score))) and bool(jnp.all((score >= 0) & (score <= 1)))

    # Validate against the f32 reference (bf16 MXU operands -> loose tolerance).
    refs = _reference(audio, text, params)
    for got, ref in zip(outs, refs):
        assert bool(jnp.allclose(got, ref, atol=5e-2, rtol=5e-2)), "mismatch vs f32 reference"

    print("KERNEL_OK")
</pallas_src>

<mosaic_0001>
module attributes {stable_mosaic.version = 11 : i64} {
  func.func @_selectivenet_kernel(%arg0: i32, %arg1: memref<8x128xf32, #tpu.memory_space<vmem>>, %arg2: memref<8x128xf32, #tpu.memory_space<vmem>>, %arg3: memref<128x128xbf16, #tpu.memory_space<vmem>>, %arg4: memref<1x128xf32, #tpu.memory_space<vmem>>, %arg5: memref<128x128xbf16, #tpu.memory_space<vmem>>, %arg6: memref<1x128xf32, #tpu.memory_space<vmem>>, %arg7: memref<128x256xbf16, #tpu.memory_space<vmem>>, %arg8: memref<128x256xbf16, #tpu.memory_space<vmem>>, %arg9: memref<8x256xf32, #tpu.memory_space<vmem>>, %arg10: memref<8x256xf32, #tpu.memory_space<vmem>>, %arg11: memref<8x8xf32, #tpu.memory_space<vmem>>) attributes {dimension_semantics = [#tpu.dimension_semantics<parallel>], iteration_bounds = array<i64: 1>, scalar_prefetch = 0 : i64, scratch_operands = 0 : i64, tpu.core_type = #tpu.core_type<tc>, window_params = [{transform_indices = @transform_0, window_bounds = array<i64: 8, 128>}, {transform_indices = @transform_1, window_bounds = array<i64: 8, 128>}, {pipeline_mode = #tpu.pipeline_mode<synchronous>, transform_indices = @transform_2, window_bounds = array<i64: 128, 128>}, {pipeline_mode = #tpu.pipeline_mode<synchronous>, transform_indices = @transform_3, window_bounds = array<i64: 1, 128>}, {pipeline_mode = #tpu.pipeline_mode<synchronous>, transform_indices = @transform_4, window_bounds = array<i64: 128, 128>}, {pipeline_mode = #tpu.pipeline_mode<synchronous>, transform_indices = @transform_5, window_bounds = array<i64: 1, 128>}, {pipeline_mode = #tpu.pipeline_mode<synchronous>, transform_indices = @transform_6, window_bounds = array<i64: 128, 256>}, {pipeline_mode = #tpu.pipeline_mode<synchronous>, transform_indices = @transform_7, window_bounds = array<i64: 128, 256>}, {pipeline_mode = #tpu.pipeline_mode<synchronous>, transform_indices = @transform_8, window_bounds = array<i64: 8, 256>}, {transform_indices = @transform_9, window_bounds = array<i64: 8, 256>}, {transform_indices = @transform_10, window_bounds = array<i64: 8, 8>}]} {
    %c0 = arith.constant 0 : index
    %c0_0 = arith.constant 0 : index
    %0 = vector.load %arg9[%c0, %c0_0] : memref<8x256xf32, #tpu.memory_space<vmem>>, vector<8x256xf32>
    %1 = vector.extract_strided_slice %0 {offsets = [0, 0], sizes = [1, 256], strides = [1, 1]} : vector<8x256xf32> to vector<1x256xf32>
    %2 = vector.extract_strided_slice %0 {offsets = [1, 0], sizes = [1, 256], strides = [1, 1]} : vector<8x256xf32> to vector<1x256xf32>
    %3 = vector.extract_strided_slice %0 {offsets = [2, 0], sizes = [1, 128], strides = [1, 1]} : vector<8x256xf32> to vector<1x128xf32>
    %4 = vector.extract_strided_slice %0 {offsets = [3, 0], sizes = [1, 8], strides = [1, 1]} : vector<8x256xf32> to vector<1x8xf32>
    %c0_1 = arith.constant 0 : index
    %c0_2 = arith.constant 0 : index
    %5 = vector.load %arg1[%c0_1, %c0_2] : memref<8x128xf32, #tpu.memory_space<vmem>>, vector<8x128xf32>
    %6 = arith.truncf %5 : vector<8x128xf32> to vector<8x128xbf16>
    %c0_3 = arith.constant 0 : index
    %c0_4 = arith.constant 0 : index
    %7 = vector.load %arg3[%c0_3, %c0_4] : memref<128x128xbf16, #tpu.memory_space<vmem>>, vector<128x128xbf16>
    %cst = arith.constant dense<0.000000e+00> : vector<8x128xf32>
    %8 = tpu.matmul %6, %7, %cst {dimension_numbers = #tpu.dot_dimension_numbers<[1], [0], [0], [1], [0, 0, 1, 1], [], []>} : vector<8x128xbf16>, vector<128x128xbf16>, vector<8x128xf32> -> vector<8x128xf32>
    %c0_5 = arith.constant 0 : index
    %c0_6 = arith.constant 0 : index
    %9 = vector.load %arg4[%c0_5, %c0_6] : memref<1x128xf32, #tpu.memory_space<vmem>>, vector<1x128xf32>
    %10 = vector.broadcast %9 : vector<1x128xf32> to vector<8x128xf32>
    %11 = arith.addf %8, %10 : vector<8x128xf32>
    %cst_7 = arith.constant 0.000000e+00 : f32
    %12 = vector.broadcast %cst_7 : f32 to vector<8x128xf32>
    %13 = arith.maximumf %11, %12 : vector<8x128xf32>
    %c0_8 = arith.constant 0 : index
    %c0_9 = arith.constant 0 : index
    %14 = vector.load %arg2[%c0_8, %c0_9] : memref<8x128xf32, #tpu.memory_space<vmem>>, vector<8x128xf32>
    %15 = arith.truncf %14 : vector<8x128xf32> to vector<8x128xbf16>
    %c0_10 = arith.constant 0 : index
    %c0_11 = arith.constant 0 : index
    %16 = vector.load %arg5[%c0_10, %c0_11] : memref<128x128xbf16, #tpu.memory_space<vmem>>, vector<128x128xbf16>
    %cst_12 = arith.constant dense<0.000000e+00> : vector<8x128xf32>
    %17 = tpu.matmul %15, %16, %cst_12 {dimension_numbers = #tpu.dot_dimension_numbers<[1], [0], [0], [1], [0, 0, 1, 1], [], []>} : vector<8x128xbf16>, vector<128x128xbf16>, vector<8x128xf32> -> vector<8x128xf32>
    %c0_13 = arith.constant 0 : index
    %c0_14 = arith.constant 0 : index
    %18 = vector.load %arg6[%c0_13, %c0_14] : memref<1x128xf32, #tpu.memory_space<vmem>>, vector<1x128xf32>
    %19 = vector.broadcast %18 : vector<1x128xf32> to vector<8x128xf32>
    %20 = arith.addf %17, %19 : vector<8x128xf32>
    %cst_15 = arith.constant 0.000000e+00 : f32
    %21 = vector.broadcast %cst_15 : f32 to vector<8x128xf32>
    %22 = arith.maximumf %20, %21 : vector<8x128xf32>
    %23 = arith.truncf %13 : vector<8x128xf32> to vector<8x128xbf16>
    %c0_16 = arith.constant 0 : index
    %c0_17 = arith.constant 0 : index
    %24 = vector.load %arg7[%c0_16, %c0_17] : memref<128x256xbf16, #tpu.memory_space<vmem>>, vector<128x256xbf16>
    %cst_18 = arith.constant dense<0.000000e+00> : vector<8x256xf32>
    %25 = tpu.matmul %23, %24, %cst_18 {dimension_numbers = #tpu.dot_dimension_numbers<[1], [0], [0], [1], [0, 0, 1, 1], [], []>} : vector<8x128xbf16>, vector<128x256xbf16>, vector<8x256xf32> -> vector<8x256xf32>
    %26 = vector.broadcast %1 : vector<1x256xf32> to vector<8x256xf32>
    %27 = arith.addf %25, %26 : vector<8x256xf32>
    %28 = arith.truncf %22 : vector<8x128xf32> to vector<8x128xbf16>
    %c0_19 = arith.constant 0 : index
    %c0_20 = arith.constant 0 : index
    %29 = vector.load %arg8[%c0_19, %c0_20] : memref<128x256xbf16, #tpu.memory_space<vmem>>, vector<128x256xbf16>
    %cst_21 = arith.constant dense<0.000000e+00> : vector<8x256xf32>
    %30 = tpu.matmul %28, %29, %cst_21 {dimension_numbers = #tpu.dot_dimension_numbers<[1], [0], [0], [1], [0, 0, 1, 1], [], []>} : vector<8x128xbf16>, vector<128x256xbf16>, vector<8x256xf32> -> vector<8x256xf32>
    %31 = vector.broadcast %2 : vector<1x256xf32> to vector<8x256xf32>
    %32 = arith.addf %30, %31 : vector<8x256xf32>
    %33 = vector.extract_strided_slice %32 {offsets = [0, 128], sizes = [8, 128], strides = [1, 1]} : vector<8x256xf32> to vector<8x128xf32>
    %34 = vector.extract_strided_slice %27 {offsets = [0, 128], sizes = [8, 128], strides = [1, 1]} : vector<8x256xf32> to vector<8x128xf32>
    %35 = arith.addf %33, %34 : vector<8x128xf32>
    %cst_22 = arith.constant 0.000000e+00 : f32
    %36 = vector.broadcast %cst_22 : f32 to vector<8x128xf32>
    %37 = arith.maximumf %35, %36 : vector<8x128xf32>
    %38 = vector.broadcast %3 : vector<1x128xf32> to vector<8x128xf32>
    %39 = arith.mulf %37, %38 : vector<8x128xf32>
    %cst_23 = arith.constant dense<0.000000e+00> : vector<8xf32>
    %40 = vector.multi_reduction <add>, %39, %cst_23 [1] : vector<8x128xf32> to vector<8xf32>
    %41 = vector.shape_cast %40 : vector<8xf32> to vector<8x1xf32>
    %42 = vector.broadcast %41 : vector<8x1xf32> to vector<8x8xf32>
    %43 = vector.broadcast %4 : vector<1x8xf32> to vector<8x8xf32>
    %44 = arith.addf %42, %43 : vector<8x8xf32>
    %45 = arith.negf %44 : vector<8x8xf32>
    %46 = math.exp %45 : vector<8x8xf32>
    %cst_24 = arith.constant 1.000000e+00 : f32
    %47 = vector.broadcast %cst_24 : f32 to vector<8x8xf32>
    %48 = arith.addf %47, %46 : vector<8x8xf32>
    %49 = arith.divf %47, %48 : vector<8x8xf32>
    %50 = vector.extract_strided_slice %27 {offsets = [0, 0], sizes = [8, 128], strides = [1, 1]} : vector<8x256xf32> to vector<8x128xf32>
    %c0_25 = arith.constant 0 : index
    %c0_26 = arith.constant 0 : index
    %51 = vector.load %arg10[%c0_25, %c0_26] : memref<8x256xf32, #tpu.memory_space<vmem>>, vector<8x128xf32>
    tpu.vector_store %arg10[%c0_25, %c0_26], %50 {strides = array<i32>} : memref<8x256xf32, #tpu.memory_space<vmem>>, vector<8x128xf32>,
    %52 = vector.extract_strided_slice %32 {offsets = [0, 0], sizes = [8, 128], strides = [1, 1]} : vector<8x256xf32> to vector<8x128xf32>
    %c0_27 = arith.constant 0 : index
    %c128 = arith.constant 128 : index
    %53 = vector.load %arg10[%c0_27, %c128] : memref<8x256xf32, #tpu.memory_space<vmem>>, vector<8x128xf32>
    tpu.vector_store %arg10[%c0_27, %c128], %52 {strides = array<i32>} : memref<8x256xf32, #tpu.memory_space<vmem>>, vector<8x128xf32>,
    %c0_28 = arith.constant 0 : index
    %c0_29 = arith.constant 0 : index
    %54 = vector.load %arg11[%c0_28, %c0_29] : memref<8x8xf32, #tpu.memory_space<vmem>>, vector<8x8xf32>
    tpu.vector_store %arg11[%c0_28, %c0_29], %49 {strides = array<i32>} : memref<8x8xf32, #tpu.memory_space<vmem>>, vector<8x8xf32>,
    return
  }
  func.func @transform_0(%arg0: i32) -> (i32, i32) {
    %c0_i32 = arith.constant 0 : i32
    %c0_i32_0 = arith.constant 0 : i32
    return %arg0, %c0_i32 : i32, i32
  }
  func.func @transform_1(%arg0: i32) -> (i32, i32) {
    %c0_i32 = arith.constant 0 : i32
    %c0_i32_0 = arith.constant 0 : i32
    return %arg0, %c0_i32 : i32, i32
  }
  func.func @transform_2(%arg0: i32) -> (i32, i32) {
    %c0_i32 = arith.constant 0 : i32
    %c0_i32_0 = arith.constant 0 : i32
    %c0_i32_1 = arith.constant 0 : i32
    return %c0_i32, %c0_i32_0 : i32, i32
  }
  func.func @transform_3(%arg0: i32) -> (i32, i32) {
    %c0_i32 = arith.constant 0 : i32
    %c0_i32_0 = arith.constant 0 : i32
    %c0_i32_1 = arith.constant 0 : i32
    return %c0_i32, %c0_i32_0 : i32, i32
  }
  func.func @transform_4(%arg0: i32) -> (i32, i32) {
    %c0_i32 = arith.constant 0 : i32
    %c0_i32_0 = arith.constant 0 : i32
    %c0_i32_1 = arith.constant 0 : i32
    return %c0_i32, %c0_i32_0 : i32, i32
  }
  func.func @transform_5(%arg0: i32) -> (i32, i32) {
    %c0_i32 = arith.constant 0 : i32
    %c0_i32_0 = arith.constant 0 : i32
    %c0_i32_1 = arith.constant 0 : i32
    return %c0_i32, %c0_i32_0 : i32, i32
  }
  func.func @transform_6(%arg0: i32) -> (i32, i32) {
    %c0_i32 = arith.constant 0 : i32
    %c0_i32_0 = arith.constant 0 : i32
    %c0_i32_1 = arith.constant 0 : i32
    return %c0_i32, %c0_i32_0 : i32, i32
  }
  func.func @transform_7(%arg0: i32) -> (i32, i32) {
    %c0_i32 = arith.constant 0 : i32
    %c0_i32_0 = arith.constant 0 : i32
    %c0_i32_1 = arith.constant 0 : i32
    return %c0_i32, %c0_i32_0 : i32, i32
  }
  func.func @transform_8(%arg0: i32) -> (i32, i32) {
    %c0_i32 = arith.constant 0 : i32
    %c0_i32_0 = arith.constant 0 : i32
    %c0_i32_1 = arith.constant 0 : i32
    return %c0_i32, %c0_i32_0 : i32, i32
  }
  func.func @transform_9(%arg0: i32) -> (i32, i32) {
    %c0_i32 = arith.constant 0 : i32
    %c0_i32_0 = arith.constant 0 : i32
    return %arg0, %c0_i32 : i32, i32
  }
  func.func @transform_10(%arg0: i32) -> (i32, i32) {
    %c0_i32 = arith.constant 0 : i32
    %c0_i32_0 = arith.constant 0 : i32
    return %arg0, %c0_i32 : i32, i32
  }
}

</mosaic_0001>

<bundles_post_ra>
// kernel: tpu_custom_call.1
= control target key start
LH: loop header
LB: loop body
LE: loop exit
PB: predicated region body
PF: predicated region fallthrough
CT: control target
= control target key end

     0   :  { %16 = vsyncpa [#allocation3], 0  ;;  %s1257_s0 = inlined_call_operand.hbm [shape: f32[8,128], index: 0, kind: input, shape index: {}]   ;;  %s1258_s1 = inlined_call_operand.hbm [shape: f32[8,128], index: 1, kind: input, shape index: {}]   ;;  %s1259_s2 = inlined_call_operand.hbm [shape: bf16[128,128], index: 2, kind: input, shape index: {}]   ;;  %s1260_s3 = inlined_call_operand.vmem [shape: f32[1,128], index: 3, kind: input, shape index: {}]   ;;  %s1261_s4 = inlined_call_operand.hbm [shape: bf16[128,128], index: 4, kind: input, shape index: {}]   ;;  %s1262_s5 = inlined_call_operand.vmem [shape: f32[1,128], index: 5, kind: input, shape index: {}]   ;;  %s1263_s6 = inlined_call_operand.hbm [shape: bf16[128,256], index: 6, kind: input, shape index: {}]   ;;  %s1264_s7 = inlined_call_operand.hbm [shape: bf16[128,256], index: 7, kind: input, shape index: {}]   ;;  %s1265_s8 = inlined_call_operand.vmem [shape: f32[8,256], index: 8, kind: input, shape index: {}]   ;;  %s1266_s9 = inlined_call_operand.hbm [shape: f32[8,256], index: 9, kind: output, shape index: {0}]   ;;  %s1267_s10 = inlined_call_operand.hbm [shape: f32[8,8], index: 10, kind: output, shape index: {1}]  }
   0x1   :  { %17 = vsyncpa [#allocation6], 0 }
   0x2   :  { %18 = vsyncpa [#allocation9], 0 }
   0x3   :  { %19 = vsyncpa [#allocation12], 0 }
   0x4   :  { %20 = vsyncpa [#allocation4], 0 }
   0x5   :  { %21 = vsyncpa [#allocation15], 0  ;;  %s1073_s13 = smov [#allocation5]   ;;  %s885_s17 = scalar_lea.hbm %s1258_s1, 128 }
   0x6   :  { %s38_s14 = sshll.u32 %s1073_s13, 4  ;;  %p886_p0 = scmp.ne.s32.totalorder %s1258_s1, %s885_s17  ;;  %s39_s14 = int_to_ptr.vmem [resolvable:$true] %s38_s14 }
   0x7   :  { %p889_p1 = scmp.lt.u32.totalorder %s885_s17, %s1258_s1 }
   0x9   :  { %p891_p2 = pnand %p889_p1, %p886_p0 }
   0xb   :  { %894 = shalt.err (!%p891_p2)
}
   0xc   :  { %s895_s22 = scalar_lea.vmem %s39_s14, 128  ;;  %p900_p4 = scmp.lt.s32.totalorder %s39_s14, %s39_s14 }
   0xd   :  { %p896_p3 = scmp.ne.s32.totalorder %s39_s14, %s895_s22  ;;  %p901_p5 = scmp.lt.s32.totalorder %s895_s22, %s895_s22 }
   0xf   :  { %p902_p6 = por %p901_p5, %p900_p4 }
  0x11   :  { %p903_p7 = pnand %p902_p6, %p896_p3 }
  0x13   :  { %906 = shalt.err (!%p903_p7)
}
  0x14   :  { %41 = dma.hbm_to_vmem [thread:$0]  %s1258_s1, 128, %s39_s14, [#allocation6]  }
  0x15   :  { %s1074_s25 = smov [#allocation8]   ;;  %s1075_s27 = smov [#allocation2]  }
  0x16   :  { %s61_s26 = sshll.u32 %s1074_s25, 4  ;;  %s28_s28 = sshll.u32 %s1075_s27, 4  ;;  %s62_s26 = int_to_ptr.vmem [resolvable:$true] %s61_s26  ;;  %s29_s28 = int_to_ptr.vmem [resolvable:$true] %s28_s28 }
  0x17   :  { %s907_s11 = scalar_lea.hbm %s1261_s4, 1024 }
  0x18   :  { %p908_p8 = scmp.ne.s32.totalorder %s1261_s4, %s907_s11  ;;  %p911_p9 = scmp.lt.u32.totalorder %s907_s11, %s1261_s4 }
  0x1a   :  { %p913_p10 = pnand %p911_p9, %p908_p8 }
  0x1c   :  { %916 = shalt.err (!%p913_p10)
}
  0x1d   :  { %s917_s1 = scalar_lea.vmem %s62_s26, 1024  ;;  %p922_p12 = scmp.lt.s32.totalorder %s62_s26, %s62_s26 }
  0x1e   :  { %p918_p11 = scmp.ne.s32.totalorder %s62_s26, %s917_s1  ;;  %p923_p13 = scmp.lt.s32.totalorder %s917_s1, %s917_s1 }
  0x20   :  { %p924_p0 = por %p923_p13, %p922_p12 }
  0x22   :  { %p925_p1 = pnand %p924_p0, %p918_p11 }
  0x24   :  { %928 = shalt.err (!%p925_p1)
}
  0x25   :  { %s1076_s14 = smov 64   ;;  %s1077_s17 = smov 4  }
  0x26   :  { %67 = dma.hbm_to_vmem [thread:$0]  %s1261_s4, 1024, %s62_s26, [#allocation9], %s1076_s14, %s1076_s14, %s1077_s17  }
  0x27   :  { %s929_s22 = scalar_lea.hbm %s1257_s0, 128 }
  0x28   :  { %p930_p2 = scmp.ne.s32.totalorder %s1257_s0, %s929_s22  ;;  %p933_p3 = scmp.lt.u32.totalorder %s929_s22, %s1257_s0 }
  0x2a   :  { %p935_p4 = pnand %p933_p3, %p930_p2 }
  0x2c   :  { %938 = shalt.err (!%p935_p4)
}
  0x2d   :  { %s939_s29 = scalar_lea.vmem %s29_s28, 128  ;;  %p944_p6 = scmp.lt.s32.totalorder %s29_s28, %s29_s28 }
  0x2e   :  { %p940_p5 = scmp.ne.s32.totalorder %s29_s28, %s939_s29  ;;  %p945_p7 = scmp.lt.s32.totalorder %s939_s29, %s939_s29 }
  0x30   :  { %p946_p8 = por %p945_p7, %p944_p6 }
  0x32   :  { %p947_p9 = pnand %p946_p8, %p940_p5 }
  0x34   :  { %950 = shalt.err (!%p947_p9)
}
  0x35   :  { %31 = dma.hbm_to_vmem [thread:$0]  %s1257_s0, 128, %s29_s28, [#allocation3]  }
  0x36   :  { %s1078_s30 = smov [#allocation7]   ;;  %s1079_s12 = smov [#allocation10]  }
  0x37   :  { %s47_s11 = sshll.u32 %s1078_s30, 4  ;;  %s75_s13 = sshll.u32 %s1079_s12, 4  ;;  %s48_s11 = int_to_ptr.vmem [resolvable:$true] %s47_s11  ;;  %s76_s13 = int_to_ptr.vmem [resolvable:$true] %s75_s13 }
  0x38   :  { %s951_s1 = scalar_lea.hbm %s1259_s2, 1024 }
  0x39   :  { %p952_p10 = scmp.ne.s32.totalorder %s1259_s2, %s951_s1  ;;  %p955_p11 = scmp.lt.u32.totalorder %s951_s1, %s1259_s2 }
  0x3b   :  { %p957_p12 = pnand %p955_p11, %p952_p10 }
  0x3d   :  { %960 = shalt.err (!%p957_p12)
}
  0x3e   :  { %s961_s0 = scalar_lea.vmem %s48_s11, 1024  ;;  %p966_p0 = scmp.lt.s32.totalorder %s48_s11, %s48_s11 }
  0x3f   :  { %p962_p13 = scmp.ne.s32.totalorder %s48_s11, %s961_s0  ;;  %p967_p1 = scmp.lt.s32.totalorder %s961_s0, %s961_s0 }
  0x41   :  { %p968_p2 = por %p967_p1, %p966_p0 }
  0x43   :  { %p969_p3 = pnand %p968_p2, %p962_p13 }
  0x45   :  { %972 = shalt.err (!%p969_p3)
}
  0x46   :  { %53 = dma.hbm_to_vmem [thread:$0]  %s1259_s2, 1024, %s48_s11, [#allocation6], %s1076_s14, %s1076_s14, %s1077_s17  }
  0x47   :  { %s973_s25 = scalar_lea.hbm %s1263_s6, 2048 }
  0x48   :  { %p974_p4 = scmp.ne.s32.totalorder %s1263_s6, %s973_s25  ;;  %p977_p5 = scmp.lt.u32.totalorder %s973_s25, %s1263_s6 }
  0x4a   :  { %p979_p6 = pnand %p977_p5, %p974_p4 }
  0x4c   :  { %982 = shalt.err (!%p979_p6)
}
  0x4d   :  { %s983_s30 = scalar_lea.vmem %s76_s13, 2048  ;;  %p988_p8 = scmp.lt.s32.totalorder %s76_s13, %s76_s13 }
  0x4e   :  { %p984_p7 = scmp.ne.s32.totalorder %s76_s13, %s983_s30  ;;  %p989_p9 = scmp.lt.s32.totalorder %s983_s30, %s983_s30 }
  0x50   :  { %p990_p10 = por %p989_p9, %p988_p8 }
  0x52   :  { %p991_p11 = pnand %p990_p10, %p984_p7 }
  0x54   :  { %994 = shalt.err (!%p991_p11)
}
  0x55   :  { %s1080_s2 = smov 128   ;;  %s1081_s14 = smov 8  }
  0x56   :  { %81 = dma.hbm_to_vmem [thread:$0]  %s1263_s6, 2048, %s76_s13, [#allocation9], %s1080_s2, %s1080_s2, %s1081_s14  }
  0x57   :  { %s1082_s12 = smov [#allocation11]   ;;  %s995_s18 = scalar_lea.hbm %s1264_s7, 2048 }
  0x58   :  { %s87_s15 = sshll.u32 %s1082_s12, 4  ;;  %p996_p12 = scmp.ne.s32.totalorder %s1264_s7, %s995_s18  ;;  %s88_s15 = int_to_ptr.vmem [resolvable:$true] %s87_s15 }
  0x59   :  { %p999_p13 = scmp.lt.u32.totalorder %s995_s18, %s1264_s7 }
  0x5b   :  { %p1001_p0 = pnand %p999_p13, %p996_p12 }
  0x5d   :  { %1004 = shalt.err (!%p1001_p0)
}
  0x5e   :  { %s1005_s28 = scalar_lea.vmem %s88_s15, 2048  ;;  %p1010_p2 = scmp.lt.s32.totalorder %s88_s15, %s88_s15 }
  0x5f   :  { %p1006_p1 = scmp.ne.s32.totalorder %s88_s15, %s1005_s28  ;;  %p1011_p3 = scmp.lt.s32.totalorder %s1005_s28, %s1005_s28 }
  0x61   :  { %p1012_p4 = por %p1011_p3, %p1010_p2 }
  0x63   :  { %p1013_p5 = pnand %p1012_p4, %p1006_p1 }
  0x65   :  { %1016 = shalt.err (!%p1013_p5)
}
  0x66   :  { %93 = dma.hbm_to_vmem [thread:$0]  %s1264_s7, 2048, %s88_s15, [#allocation12], %s1080_s2, %s1080_s2, %s1081_s14  }
  0x67   :  { %1061 = dma.done.wait [#allocation3], 128  }
  0x68   :  { %1062 = vsyncadd [#allocation3], 4294967168 }
  0x69   :  { %1063 = dma.done.wait [#allocation6], 1152  }
  0x6a   :  { %1064 = vsyncadd [#allocation6], 4294966144 }
  0x6b   :  { %1065 = dma.done.wait [#allocation9], 3072  }
  0x6c   :  { %1066 = vsyncadd [#allocation9], 4294964224 }
  0x6d   :  { %1067 = dma.done.wait [#allocation12], 2048  }
  0x6e   :  { %1068 = vsyncadd [#allocation12], 4294965248  ;;  %v1083_v0 = vmov 0.0   ;;  %vm1084_vm0 = vmmov 0   ;;  %v817_v1 = vld [vmem:[#allocation7] sm:$0xff]   ;;  %v819_v3 = vld [vmem:[#allocation7 + $0x8] sm:$0xff]  }
  0x6f   :  { %762 = vmatprep.subr.bf16.mxu0 %v1083_v0  ;;  %782 = vmatprep.subr.bf16.mxu1 %v1083_v0  ;;  %v818_v2 = vld [vmem:[#allocation8] sm:$0xff]   ;;  %v820_v4 = vld [vmem:[#allocation8 + $0x8] sm:$0xff]   ;;  %v821_v5 = vld [vmem:[#allocation7 + $0x10] sm:$0xff]   ;;  %v1085_v53 = vmov 0  }
  0x70   :  { %778 = vmatprep.mubr.msk.bf16.mxu0 %vm1084_vm0, %v1083_v0  ;;  %798 = vmatprep.mubr.msk.bf16.mxu1 %vm1084_vm0, %v1083_v0  ;;  %v822_v6 = vld [vmem:[#allocation8 + $0x10] sm:$0xff]   ;;  %v823_v7 = vld [vmem:[#allocation7 + $0x18] sm:$0xff]   ;;  %v825_v9 = vld [vmem:[#allocation7 + $0x20] sm:$0xff]  }
  0x71   :  { %763 = vmatpush3.bf16.msra.mxu0 %v817_v1  ;;  %783 = vmatpush3.bf16.msra.mxu1 %v818_v2  ;;  %v824_v8 = vld [vmem:[#allocation8 + $0x18] sm:$0xff]   ;;  %v826_v10 = vld [vmem:[#allocation8 + $0x20] sm:$0xff]   ;;  %v827_v11 = vld [vmem:[#allocation7 + $0x28] sm:$0xff]  }
  0x72   :  { %764 = vmatprep.subr.bf16.mxu0 %v1083_v0  ;;  %784 = vmatprep.subr.bf16.mxu1 %v1083_v0  ;;  %v828_v12 = vld [vmem:[#allocation8 + $0x28] sm:$0xff]   ;;  %v829_v13 = vld [vmem:[#allocation7 + $0x30] sm:$0xff]   ;;  %v831_v15 = vld [vmem:[#allocation7 + $0x38] sm:$0xff]  }
  0x73   :  { %v830_v14 = vld [vmem:[#allocation8 + $0x30] sm:$0xff]   ;;  %v832_v16 = vld [vmem:[#allocation8 + $0x38] sm:$0xff]   ;;  %v835_v19 = vld [vmem:[#allocation10 + $0x4] ss:$8 sps:$4 sm:$0xff]  }
  0x74   :  { %v117_v17 = vld [vmem:[#allocation2] sm:$0xff]  ;;  %v231_v18 = vld [vmem:[#allocation5] sm:$0xff]  ;;  %v838_v20 = vld [vmem:[#allocation11 + $0x4] ss:$8 sps:$4 sm:$0xff]  }
  0x75   :  { %765 = vmatpush3.bf16.msra.mxu0 %v819_v3  ;;  %785 = vmatpush3.bf16.msra.mxu1 %v820_v4  ;;  %v118_v21 = vpack.c.bf16 %v117_v17, %v117_v17  ;;  %v833_v22 = vld [vmem:[#allocation10] ss:$8 sps:$4 sm:$0xff]   ;;  %v232_v23 = vpack.c.bf16 %v231_v18, %v231_v18  ;;  %v841_v25 = vld [vmem:[#allocation10 + $0x14] ss:$8 sps:$4 sm:$0xff]   ;;  %v839_v27 = vld [vmem:[#allocation10 + $0x10] ss:$8 sps:$4 sm:$0xff]  }
  0x76   :  { %766 = vmatprep.subr.bf16.mxu0 %v1083_v0  ;;  %786 = vmatprep.subr.bf16.mxu1 %v1083_v0  ;;  %v836_v24 = vld [vmem:[#allocation11] ss:$8 sps:$4 sm:$0xff]   ;;  %v844_v26 = vld [vmem:[#allocation11 + $0x14] ss:$8 sps:$4 sm:$0xff]   ;;  %v842_v28 = vld [vmem:[#allocation11 + $0x10] ss:$8 sps:$4 sm:$0xff]  }
  0x77   :  { %v847_v29 = vld [vmem:[#allocation10 + $0x24] ss:$8 sps:$4 sm:$0xff]   ;;  %v845_v31 = vld [vmem:[#allocation10 + $0x20] ss:$8 sps:$4 sm:$0xff]   ;;  %v853_v33 = vld [vmem:[#allocation10 + $0x34] ss:$8 sps:$4 sm:$0xff]  }
  0x78   :  { %v850_v30 = vld [vmem:[#allocation11 + $0x24] ss:$8 sps:$4 sm:$0xff]   ;;  %v848_v32 = vld [vmem:[#allocation11 + $0x20] ss:$8 sps:$4 sm:$0xff]   ;;  %v856_v34 = vld [vmem:[#allocation11 + $0x34] ss:$8 sps:$4 sm:$0xff]  }
  0x79   :  { %767 = vmatpush3.bf16.msra.mxu0 %v821_v5  ;;  %787 = vmatpush3.bf16.msra.mxu1 %v822_v6  ;;  %v851_v35 = vld [vmem:[#allocation10 + $0x30] ss:$8 sps:$4 sm:$0xff]   ;;  %v859_v37 = vld [vmem:[#allocation10 + $0x44] ss:$8 sps:$4 sm:$0xff]   ;;  %v857_v39 = vld [vmem:[#allocation10 + $0x40] ss:$8 sps:$4 sm:$0xff]   ;;  %v362_v6 = vlaneseq }
  0x7a   :  { %768 = vmatprep.subr.bf16.mxu0 %v1083_v0  ;;  %788 = vmatprep.subr.bf16.mxu1 %v1083_v0  ;;  %v854_v36 = vld [vmem:[#allocation11 + $0x30] ss:$8 sps:$4 sm:$0xff]   ;;  %v862_v38 = vld [vmem:[#allocation11 + $0x44] ss:$8 sps:$4 sm:$0xff]   ;;  %v860_v40 = vld [vmem:[#allocation11 + $0x40] ss:$8 sps:$4 sm:$0xff]  }
  0x7b   :  { %v865_v41 = vld [vmem:[#allocation10 + $0x54] ss:$8 sps:$4 sm:$0xff]   ;;  %v863_v43 = vld [vmem:[#allocation10 + $0x50] ss:$8 sps:$4 sm:$0xff]   ;;  %v871_v45 = vld [vmem:[#allocation10 + $0x64] ss:$8 sps:$4 sm:$0xff]  }
  0x7c   :  { %v868_v42 = vld [vmem:[#allocation11 + $0x54] ss:$8 sps:$4 sm:$0xff]   ;;  %v866_v44 = vld [vmem:[#allocation11 + $0x50] ss:$8 sps:$4 sm:$0xff]   ;;  %v874_v46 = vld [vmem:[#allocation11 + $0x64] ss:$8 sps:$4 sm:$0xff]  }
  0x7d   :  { %769 = vmatpush3.bf16.msra.mxu0 %v823_v7  ;;  %789 = vmatpush3.bf16.msra.mxu1 %v824_v8  ;;  %v869_v47 = vld [vmem:[#allocation10 + $0x60] ss:$8 sps:$4 sm:$0xff]   ;;  %v877_v49 = vld [vmem:[#allocation10 + $0x74] ss:$8 sps:$4 sm:$0xff]   ;;  %v875_v51 = vld [vmem:[#allocation10 + $0x70] ss:$8 sps:$4 sm:$0xff]  }
  0x7e   :  { %770 = vmatprep.subr.bf16.mxu0 %v1083_v0  ;;  %790 = vmatprep.subr.bf16.mxu1 %v1083_v0  ;;  %v872_v48 = vld [vmem:[#allocation11 + $0x60] ss:$8 sps:$4 sm:$0xff]   ;;  %v880_v50 = vld [vmem:[#allocation11 + $0x74] ss:$8 sps:$4 sm:$0xff]   ;;  %v878_v52 = vld [vmem:[#allocation11 + $0x70] ss:$8 sps:$4 sm:$0xff]  }
  0x7f   :  { %v693_v54 = vld [vmem:[%s1260_s3] ss:$0 sm:$0xff]  ;;  %v363_v7 = vshrl.u32 %v362_v6, 7 }
  0x80   :  { %v702_v55 = vld [vmem:[%s1262_s5] ss:$0 sm:$0xff] }
  0x81   :  { %771 = vmatpush3.bf16.msra.mxu0 %v825_v9  ;;  %791 = vmatpush3.bf16.msra.mxu1 %v826_v10  ;;  %v364_v8 = vsub.s32 0, %v363_v7  ;;  %v115_v9 = vld [vmem:[%s1265_s8] sm:$0xff]  ;;  %v510_v10 = vsub.s32 1, %v363_v7 }
  0x82   :  { %772 = vmatprep.subr.bf16.mxu0 %v1083_v0  ;;  %792 = vmatprep.subr.bf16.mxu1 %v1083_v0 }
  0x85   :  { %773 = vmatpush3.bf16.msra.mxu0 %v827_v11  ;;  %793 = vmatpush3.bf16.msra.mxu1 %v828_v12  ;;  %v116_v11 = vld [vmem:[%s1265_s8 + $0x8] sm:$0xff]  ;;  %v365_v12 = vrot.slane %v115_v9, %v364_v8  ;;  %s1086_s8 = smov [#allocation13]  }
  0x86   :  { %774 = vmatprep.subr.bf16.mxu0 %v1083_v0  ;;  %794 = vmatprep.subr.bf16.mxu1 %v1083_v0  ;;  %s667_s29 = sshll.u32 %s1086_s8, 4  ;;  %s668_s29 = int_to_ptr.vmem [resolvable:$true] %s667_s29 }
  0x87   :  { %s1017_s4 = scalar_lea.vmem %s668_s29, 256  ;;  %p1022_p7 = scmp.lt.s32.totalorder %s668_s29, %s668_s29 }
  0x88   :  { %p1018_p6 = scmp.ne.s32.totalorder %s668_s29, %s1017_s4  ;;  %p1023_p8 = scmp.lt.s32.totalorder %s1017_s4, %s1017_s4 }
  0x89   :  { %775 = vmatpush3.bf16.msra.mxu0 %v829_v13  ;;  %795 = vmatpush3.bf16.msra.mxu1 %v830_v14  ;;  %v511_v13 = vrot.slane %v115_v9, %v510_v10  ;;  %v369_v14 = vrot.slane %v116_v11, %v364_v8 }
  0x8a   :  { %776 = vmatprep.subr.bf16.mxu0 %v1083_v0  ;;  %796 = vmatprep.subr.bf16.mxu1 %v1083_v0  ;;  %p1024_p9 = por %p1023_p8, %p1022_p7 }
  0x8c   :  { %p1025_p10 = pnand %p1024_p9, %p1018_p6 }
  0x8d   :  { %777 = vmatpush3.bf16.msra.mxu0 %v831_v15  ;;  %797 = vmatpush3.bf16.msra.mxu1 %v832_v16  ;;  %v515_v15 = vrot.slane %v116_v11, %v510_v10 }
  0x8e   :  { %450 = vmatprep.subr.bf16.mxu0 %v835_v19  ;;  %596 = vmatprep.subr.bf16.mxu1 %v838_v20  ;;  %v641_v20 = vsub.s32 2, %v363_v7 }
  0x90   :  { %779 = vmatmul.mubr.bf16.vlgmr.msra.gmra.mrb[0].mxu0 %v118_v21  ;;  %799 = vmatmul.mubr.bf16.vlgmr.msra.gmra.mrb[0].mxu1 %v232_v23 }
  0x91   :  { %451 = vmatpush1.bf16.msra.mxu0 %v833_v22  ;;  %597 = vmatpush1.bf16.msra.mxu1 %v836_v24 }
  0x92   :  { %452 = vmatprep.subr.bf16.mxu0 %v841_v25  ;;  %598 = vmatprep.subr.bf16.mxu1 %v844_v26 }
  0x93   :  { %482 = vmatprep.mubr.bf16.mxu0 %v1085_v53  ;;  %628 = vmatprep.mubr.bf16.mxu1 %v1085_v53 }
  0x95   :  { %453 = vmatpush1.bf16.msra.mxu0 %v839_v27  ;;  %599 = vmatpush1.bf16.msra.mxu1 %v842_v28 }
  0x96   :  { %454 = vmatprep.subr.bf16.mxu0 %v847_v29  ;;  %600 = vmatprep.subr.bf16.mxu1 %v850_v30  ;;  %v642_v30 = vrot.slane %v115_v9, %v641_v20 }
  0x99   :  { %455 = vmatpush1.bf16.msra.mxu0 %v845_v31  ;;  %601 = vmatpush1.bf16.msra.mxu1 %v848_v32 }
  0x9a   :  { %456 = vmatprep.subr.bf16.mxu0 %v853_v33  ;;  %602 = vmatprep.subr.bf16.mxu1 %v856_v34 }
  0x9d   :  { %457 = vmatpush1.bf16.msra.mxu0 %v851_v35  ;;  %603 = vmatpush1.bf16.msra.mxu1 %v854_v36 }
  0x9e   :  { %458 = vmatprep.subr.bf16.mxu0 %v859_v37  ;;  %604 = vmatprep.subr.bf16.mxu1 %v862_v38 }
  0xa1   :  { %459 = vmatpush1.bf16.msra.mxu0 %v857_v39  ;;  %605 = vmatpush1.bf16.msra.mxu1 %v860_v40 }
  0xa2   :  { %460 = vmatprep.subr.bf16.mxu0 %v865_v41  ;;  %606 = vmatprep.subr.bf16.mxu1 %v868_v42 }
  0xa5   :  { %461 = vmatpush1.bf16.msra.mxu0 %v863_v43  ;;  %607 = vmatpush1.bf16.msra.mxu1 %v866_v44 }
  0xa6   :  { %462 = vmatprep.subr.bf16.mxu0 %v871_v45  ;;  %608 = vmatprep.subr.bf16.mxu1 %v874_v46 }
  0xa9   :  { %463 = vmatpush1.bf16.msra.mxu0 %v869_v47  ;;  %609 = vmatpush1.bf16.msra.mxu1 %v872_v48 }
  0xaa   :  { %464 = vmatprep.subr.bf16.mxu0 %v877_v49  ;;  %610 = vmatprep.subr.bf16.mxu1 %v880_v50 }
  0xad   :  { %465 = vmatpush1.bf16.msra.mxu0 %v875_v51  ;;  %611 = vmatpush1.bf16.msra.mxu1 %v878_v52 }
 0x163   :  { %v224_v56 = vpop.f32.mrb[0].mxu0  ;;  %v338_v58 = vpop.f32.mrb[0].mxu1 }
 0x164   :  { %v225_v57 = vadd.f32 %v693_v54, %v224_v56  ;;  %v780_v59 = vpop.f32.mrb[1].mxu0  ;;  %v339_v60 = vadd.f32 %v702_v55, %v338_v58  ;;  %v800_v61 = vpop.f32.mrb[1].mxu1 }
 0x165   :  { %v227_v62 = vpop.f32.mrb[2].mxu0  ;;  %v341_v0 = vpop.f32.mrb[2].mxu1 }
 0x166   :  { %v230_v63 = vmax.f32 %v225_v57, 0.0  ;;  %v781_v1 = vpop.f32.mrb[3].mxu0  ;;  %v344_v2 = vmax.f32 %v339_v60, 0.0  ;;  %v801_v3 = vpop.f32.mrb[3].mxu1 }
 0x168   :  { %v345_v4 = vpack.c.bf16 %v230_v63, %v230_v63  ;;  %v491_v5 = vpack.c.bf16 %v344_v2, %v344_v2 }
 0x16a   :  { %483 = vmatmul.mubr.bf16.vlgmr.msra.gmra.mrb[4].mxu0 %v345_v4  ;;  %629 = vmatmul.mubr.bf16.vlgmr.msra.gmra.mrb[4].mxu1 %v491_v5 }
 0x23d   :  { %v484_v16 = vpop.f32.mrb[4].mxu0  ;;  %v630_v18 = vpop.f32.mrb[4].mxu1 }
 0x23e   :  { %v485_v17 = vadd.f32 %v484_v16, %v365_v12  ;;  %v486_v19 = vpop.f32.mrb[5].mxu0  ;;  %v631_v21 = vadd.f32 %v630_v18, %v511_v13  ;;  %v632_v23 = vpop.f32.mrb[5].mxu1 }
 0x23f   :  { %v487_v22 = vadd.f32 %v486_v19, %v369_v14  ;;  %v488_v24 = vpop.f32.mrb[6].mxu0  ;;  %v633_v25 = vadd.f32 %v632_v23, %v515_v15  ;;  %v634_v26 = vpop.f32.mrb[6].mxu1 }
 0x240   :  { %657 = vst [vmem:[#allocation13] sm:$0xff] %v485_v17  ;;  %v489_v27 = vpop.f32.mrb[7].mxu0  ;;  %658 = vst [vmem:[#allocation13 + $0x8] sm:$0xff] %v631_v21  ;;  %v635_v28 = vpop.f32.mrb[7].mxu1 }
 0x241   :  { %v637_v29 = vadd.f32 %v633_v25, %v487_v22 }
 0x243   :  { %v638_v31 = vmax.f32 %v637_v29, 0.0 }
 0x245   :  { %v643_v32 = vmul.f32 %v642_v30, %v638_v31 }
 0x247   :  { %644 = vadd.xlane.f32.xlu0 %v643_v32 }
 0x248   :  { %1028 = shalt.err (!%p1025_p10)
}
 0x249   :  { %s1029_s2 = scalar_lea.hbm %s1266_s9, 256 }
 0x24a   :  { %p1030_p11 = scmp.ne.s32.totalorder %s1266_s9, %s1029_s2  ;;  %p1033_p12 = scmp.lt.u32.totalorder %s1029_s2, %s1266_s9 }
 0x24c   :  { %p1035_p13 = pnand %p1033_p12, %p1030_p11 }
 0x24e   :  { %1038 = shalt.err (!%p1035_p13)
}
 0x24f   :  { %670 = dma.vmem_to_hbm [thread:$0]  %s668_s29, 256, %s1266_s9, [#allocation4]   ;;  %v648_v33 = vsub.s32 3, %v363_v7  ;;  %vm659_vm1 = vcmask 64512  }
 0x250   :  { %s1087_s1 = smov [#allocation14]  }
 0x251   :  { %v649_v34 = vrot.slane %v115_v9, %v648_v33  ;;  %s677_s18 = sshll.u32 %s1087_s1, 4  ;;  %s678_s18 = int_to_ptr.vmem [resolvable:$true] %s677_s18 }
 0x252   :  { %s1039_s19 = scalar_lea.vmem %s678_s18, 128  ;;  %p1044_p1 = scmp.lt.s32.totalorder %s678_s18, %s678_s18 }
 0x253   :  { %p1040_p0 = scmp.ne.s32.totalorder %s678_s18, %s1039_s19  ;;  %p1045_p2 = scmp.lt.s32.totalorder %s1039_s19, %s1039_s19 }
 0x255   :  { %p1046_p3 = por %p1045_p2, %p1044_p1 }
 0x257   :  { %p1047_p4 = pnand %p1046_p3, %p1040_p0 }
 0x2d4   :  { %v645_v35 = vpop.xlane.xlu0 %644 }
 0x2d5   :  { %v650_v36 = vadd.f32 %v649_v34, %v645_v35 }
 0x2d7   :  { %v743_v37 = vmul.f32 -1.442695, %v650_v36 }
 0x2d9   :  { %881 = vpow2.f32 %v743_v37 }
 0x2e3   :  { %v882_v38 = vpop.eup %881 }
 0x2e4   :  { %v654_v39 = vadd.f32 1.0, %v882_v38 }
 0x2e6   :  { %883 = vrcp.f32 %v654_v39 }
 0x2f0   :  { %v884_v40 = vpop.eup %883 }
 0x2f1   :  { %660 = vst.msk [vmem:[#allocation14] sm:$0xff] %vm659_vm1, %v884_v40 }
 0x2f2   :  { %1050 = shalt.err (!%p1047_p4)
}
 0x2f3   :  { %s1051_s21 = scalar_lea.hbm %s1267_s10, 128 }
 0x2f4   :  { %p1052_p5 = scmp.ne.s32.totalorder %s1267_s10, %s1051_s21  ;;  %p1055_p6 = scmp.lt.u32.totalorder %s1051_s21, %s1267_s10 }
 0x2f6   :  { %p1057_p7 = pnand %p1055_p6, %p1052_p5 }
 0x2f8   :  { %1060 = shalt.err (!%p1057_p7)
}
 0x2f9   :  { %680 = dma.vmem_to_hbm [thread:$0]  %s678_s18, 128, %s1267_s10, [#allocation15]  }
 0x2fa   :  { %1069 = dma.done.wait [#allocation4], 256  }
 0x2fb   :  { %1070 = vsyncadd [#allocation4], 4294967040 }
 0x2fc   :  { %1071 = dma.done.wait [#allocation15], 128  }
 0x2fd   :  { %1072 = vsyncadd [#allocation15], 4294967168 }
 0x2fe   :  { %687 = vsyncpa [#allocation3], 1 }
 0x2ff   :  { %688 = vsyncpa [#allocation6], 1 }
 0x300   :  { %689 = vsyncpa [#allocation9], 1 }
 0x301   :  { %690 = vsyncpa [#allocation12], 1 }
 0x302   :  { %691 = vsyncpa [#allocation4], 1 }
 0x303   :  { %692 = vsyncpa [#allocation15], 1 }

</bundles_post_ra>
